<compile_context>
chip_gen: v6e
topology: v6e:2x2x1
jax: 0.10.0
libtpu: 0.0.40
codegen_flags: <defaults>
</compile_context>

<pallas_src>
import functools

import jax
import jax.numpy as jnp
from jax.experimental import pallas as pl
from jax.experimental.pallas import tpu as pltpu

LANE = 128  # pad hidden / class dims to this so stores are lane-dense


def _pad_to(x, shape):
    pads = [(0, t - s) for s, t in zip(x.shape, shape)]
    return jnp.pad(x, pads)


# ---------------------------------------------------------------------------
# Kernel A: gc1 + gc2 + pooling scores (fully fused, single VMEM residency)
# ---------------------------------------------------------------------------
def gc12_scores_kernel(x_ref, adj_ref, w1_ref, b1_ref, w2_ref, b2_ref,
                       wp_ref, bp_ref, x2_ref, s_ref):
    # gc1, re-associated: (adj @ x) @ W1  (nfeat < nhid -> N^2*F MACs instead of N^2*H)
    ax = jnp.dot(adj_ref[...], x_ref[...], preferred_element_type=jnp.float32)
    h1 = jnp.dot(ax, w1_ref[...], preferred_element_type=jnp.float32) + b1_ref[...]
    h1 = jnp.maximum(h1, 0.0)
    # dropout: identity (eval-mode semantics)
    # gc2: adj @ (h1 @ W2) + b2, relu
    s2 = jnp.dot(h1, w2_ref[...], preferred_element_type=jnp.float32)
    h2 = jnp.dot(adj_ref[...], s2, preferred_element_type=jnp.float32) + b2_ref[...]
    h2 = jnp.maximum(h2, 0.0)
    x2_ref[...] = h2                                     # lane-dense (N, 128) store
    # pooling scorer: sigmoid(h2 @ w_pool + b_pool); w_pool passed as a (1, Hp) row,
    # bias is an SMEM scalar (no VMEM vreg/DMA wasted on a single value)
    sc = jnp.sum(h2 * wp_ref[...], axis=1, keepdims=True) + bp_ref[0, 0]
    s_ref[...] = 1.0 / (1.0 + jnp.exp(-sc))


def gc12_scores(x, adj, w1, b1, w2, b2, wp_row, bp):
    n, f = x.shape
    hp = w1.shape[1]
    return pl.pallas_call(
        gc12_scores_kernel,
        out_shape=(jax.ShapeDtypeStruct((n, hp), jnp.float32),
                   jax.ShapeDtypeStruct((n, 1), jnp.float32)),
        in_specs=[
            pl.BlockSpec((n, f), lambda: (0, 0)),
            pl.BlockSpec((n, n), lambda: (0, 0)),
            pl.BlockSpec((f, hp), lambda: (0, 0)),
            pl.BlockSpec((1, hp), lambda: (0, 0)),
            pl.BlockSpec((hp, hp), lambda: (0, 0)),
            pl.BlockSpec((1, hp), lambda: (0, 0)),
            pl.BlockSpec((1, hp), lambda: (0, 0)),
            pl.BlockSpec(memory_space=pltpu.MemorySpace.SMEM),   # pool bias scalar
        ],
        out_specs=(pl.BlockSpec((n, hp), lambda: (0, 0)),
                   pl.BlockSpec((n, 1), lambda: (0, 0))),
    )(x, adj, w1, b1, w2, b2, wp_row, bp)


# ---------------------------------------------------------------------------
# Kernel B: gc3 + gc4 + mean-pool + fc + masked log_softmax (fully fused)
# ---------------------------------------------------------------------------
def gc34_head_kernel(xp_ref, adjp_ref, w3_ref, b3_ref, w4_ref, b4_ref,
                     wfc_ref, bfc_ref, o_ref, *, nclass):
    s3 = jnp.dot(xp_ref[...], w3_ref[...], preferred_element_type=jnp.float32)
    h3 = jnp.dot(adjp_ref[...], s3, preferred_element_type=jnp.float32) + b3_ref[...]
    h3 = jnp.maximum(h3, 0.0)
    # dropout: identity (eval-mode semantics)
    s4 = jnp.dot(h3, w4_ref[...], preferred_element_type=jnp.float32)
    h4 = jnp.dot(adjp_ref[...], s4, preferred_element_type=jnp.float32) + b4_ref[...]
    h4 = jnp.maximum(h4, 0.0)
    # mean over the K real (pooled) nodes -- block height == true K, no padded rows
    xm = jnp.mean(h4, axis=0, keepdims=True)                               # (1, Hp)
    logits = jnp.dot(xm, wfc_ref[...], preferred_element_type=jnp.float32) + bfc_ref[...]
    # mask padded class lanes so they don't pollute max / sum
    col = jax.lax.broadcasted_iota(jnp.int32, logits.shape, 1)
    valid = col < nclass
    masked = jnp.where(valid, logits, jnp.float32(-1e30))
    m = jnp.max(masked, axis=1, keepdims=True)
    shifted = masked - m
    lse = jnp.log(jnp.sum(jnp.where(valid, jnp.exp(shifted), 0.0),
                          axis=1, keepdims=True))
    o_ref[...] = shifted - lse                                             # (1, Cp)


def gc34_head(xp, adjp, w3, b3, w4, b4, wfc, bfc, nclass):
    k, hp = xp.shape
    cp = wfc.shape[1]
    out = pl.pallas_call(
        functools.partial(gc34_head_kernel, nclass=nclass),
        out_shape=jax.ShapeDtypeStruct((1, cp), jnp.float32),
        in_specs=[
            pl.BlockSpec((k, hp), lambda: (0, 0)),
            pl.BlockSpec((k, k), lambda: (0, 0)),
            pl.BlockSpec((hp, hp), lambda: (0, 0)),
            pl.BlockSpec((1, hp), lambda: (0, 0)),
            pl.BlockSpec((hp, hp), lambda: (0, 0)),
            pl.BlockSpec((1, hp), lambda: (0, 0)),
            pl.BlockSpec((hp, cp), lambda: (0, 0)),
            pl.BlockSpec((1, cp), lambda: (0, 0)),
        ],
        out_specs=pl.BlockSpec((1, cp), lambda: (0, 0)),
    )(xp, adjp, w3, b3, w4, b4, wfc, bfc)
    return out[:, :nclass]


# ---------------------------------------------------------------------------
# Parameter init (PyTorch-like shapes; padded lane-dense copies built once)
# ---------------------------------------------------------------------------
def init_params(key, nfeat, nhid, nclass, hp=LANE, cp=LANE):
    ks = jax.random.split(key, 12)

    def xu(k, fi, fo):
        bound = jnp.sqrt(6.0 / (fi + fo))
        return jax.random.uniform(k, (fi, fo), jnp.float32, -bound, bound)

    raw = {
        "w1": xu(ks[0], nfeat, nhid), "b1": 0.1 * jax.random.normal(ks[1], (nhid,), jnp.float32),
        "w2": xu(ks[2], nhid, nhid),  "b2": 0.1 * jax.random.normal(ks[3], (nhid,), jnp.float32),
        "w3": xu(ks[4], nhid, nhid),  "b3": 0.1 * jax.random.normal(ks[5], (nhid,), jnp.float32),
        "w4": xu(ks[6], nhid, nhid),  "b4": 0.1 * jax.random.normal(ks[7], (nhid,), jnp.float32),
        "wfc": xu(ks[8], nhid, nclass), "bfc": 0.1 * jax.random.normal(ks[9], (nclass,), jnp.float32),
        "wp": xu(ks[10], nhid, 1),      "bp": 0.1 * jax.random.normal(ks[11], (1,), jnp.float32),
    }
    padded = {
        "w1": _pad_to(raw["w1"], (nfeat, hp)), "b1": _pad_to(raw["b1"].reshape(1, nhid), (1, hp)),
        "w2": _pad_to(raw["w2"], (hp, hp)),    "b2": _pad_to(raw["b2"].reshape(1, nhid), (1, hp)),
        "w3": _pad_to(raw["w3"], (hp, hp)),    "b3": _pad_to(raw["b3"].reshape(1, nhid), (1, hp)),
        "w4": _pad_to(raw["w4"], (hp, hp)),    "b4": _pad_to(raw["b4"].reshape(1, nhid), (1, hp)),
        "wfc": _pad_to(raw["wfc"], (hp, cp)),  "bfc": _pad_to(raw["bfc"].reshape(1, nclass), (1, cp)),
        "wp_row": _pad_to(raw["wp"].reshape(1, nhid), (1, hp)),
        "bp": raw["bp"].reshape(1, 1),
    }
    return raw, padded


# ---------------------------------------------------------------------------
# Full forward (matches HierarchicalGCN.forward, eval mode)
# ---------------------------------------------------------------------------
def hierarchical_gcn_forward(padded, x, adj, *, nclass, pool_ratio=0.5):
    n = x.shape[0]
    x2_pad, scores = gc12_scores(x, adj, padded["w1"], padded["b1"],
                                 padded["w2"], padded["b2"],
                                 padded["wp_row"], padded["bp"])
    # pool_nodes: top-k selection + data-dependent gather kept in plain JAX
    k = int(n * pool_ratio)
    _, idx = jax.lax.top_k(scores.reshape(-1), k)
    xp = x2_pad[idx]
    adjp = adj[idx][:, idx]
    # TODO(synk): for large N, gather rows/cols inside the kernel via
    # PrefetchScalarGridSpec + pl.Element index_maps instead of materializing adjp.
    return gc34_head(xp, adjp, padded["w3"], padded["b3"],
                     padded["w4"], padded["b4"],
                     padded["wfc"], padded["bfc"], nclass)


# Pure-JAX reference (unpadded params, original adj @ (x @ W) association)
def reference_forward(raw, x, adj, nclass, pool_ratio=0.5):
    def gc(x_, adj_, w, b):
        return jnp.maximum(adj_ @ (x_ @ w) + b, 0.0)

    n = x.shape[0]
    x1 = gc(x, adj, raw["w1"], raw["b1"])
    x2 = gc(x1, adj, raw["w2"], raw["b2"])
    scores = jax.nn.sigmoid(x2 @ raw["wp"] + raw["bp"]).reshape(-1)
    k = int(n * pool_ratio)
    _, idx = jax.lax.top_k(scores, k)
    xp, adjp = x2[idx], adj[idx][:, idx]
    x3 = gc(xp, adjp, raw["w3"], raw["b3"])
    x4 = gc(x3, adjp, raw["w4"], raw["b4"])
    xm = jnp.mean(x4, axis=0, keepdims=True)
    logits = xm @ raw["wfc"] + raw["bfc"]
    return jax.nn.log_softmax(logits, axis=1)


if __name__ == "__main__":
    N, NFEAT, NHID, NCLASS = 16, 8, 32, 4

    key = jax.random.PRNGKey(0)
    k_x, k_adj, k_p = jax.random.split(key, 3)

    x = jax.random.normal(k_x, (N, NFEAT), jnp.float32)
    a = jax.random.uniform(k_adj, (N, N), jnp.float32)
    adj = 0.5 * (a + a.T)                        # symmetric dense adjacency

    raw, padded = init_params(k_p, NFEAT, NHID, NCLASS)

    fwd = jax.jit(functools.partial(hierarchical_gcn_forward, padded, nclass=NCLASS))
    out = fwd(x, adj)
    jax.block_until_ready(out)

    ref = reference_forward(raw, x, adj, NCLASS)
    assert out.shape == (1, NCLASS)
    assert jnp.allclose(out, ref, atol=1e-4, rtol=1e-4), "mismatch vs reference"

    # TODO(synk): dropout omitted (eval-mode identity); training-mode dropout would
    # need pltpu.prng_* inside the kernels.  bf16 matmul operands and a node-row
    # grid (parallel axis for v7x's 2 TCs, smaller adj tiles for 64 MiB VMEM) are
    # the next steps when N grows beyond single-block size.
    print("KERNEL_OK")
</pallas_src>

<mosaic_0001>
module attributes {stable_mosaic.version = 11 : i64} {
  func.func @gc12_scores_kernel(%arg0: memref<16x8xf32, #tpu.memory_space<vmem>>, %arg1: memref<16x16xf32, #tpu.memory_space<vmem>>, %arg2: memref<8x128xf32, #tpu.memory_space<vmem>>, %arg3: memref<1x128xf32, #tpu.memory_space<vmem>>, %arg4: memref<128x128xf32, #tpu.memory_space<vmem>>, %arg5: memref<1x128xf32, #tpu.memory_space<vmem>>, %arg6: memref<1x128xf32, #tpu.memory_space<vmem>>, %arg7: memref<1x1xf32, #tpu.memory_space<smem>>, %arg8: memref<16x128xf32, #tpu.memory_space<vmem>>, %arg9: memref<16x1xf32, #tpu.memory_space<vmem>>) attributes {dimension_semantics = [], scalar_prefetch = 0 : i64, scratch_operands = 0 : i64, tpu.core_type = #tpu.core_type<tc>} {
    %c0 = arith.constant 0 : index
    %c0_0 = arith.constant 0 : index
    %0 = vector.load %arg1[%c0, %c0_0] : memref<16x16xf32, #tpu.memory_space<vmem>>, vector<16x16xf32>
    %c0_1 = arith.constant 0 : index
    %c0_2 = arith.constant 0 : index
    %1 = vector.load %arg0[%c0_1, %c0_2] : memref<16x8xf32, #tpu.memory_space<vmem>>, vector<16x8xf32>
    %cst = arith.constant dense<0.000000e+00> : vector<16x8xf32>
    %2 = tpu.matmul %0, %1, %cst {dimension_numbers = #tpu.dot_dimension_numbers<[1], [0], [0], [1], [0, 0, 1, 1], [], []>} : vector<16x16xf32>, vector<16x8xf32>, vector<16x8xf32> -> vector<16x8xf32>
    %c0_3 = arith.constant 0 : index
    %c0_4 = arith.constant 0 : index
    %3 = vector.load %arg2[%c0_3, %c0_4] : memref<8x128xf32, #tpu.memory_space<vmem>>, vector<8x128xf32>
    %cst_5 = arith.constant dense<0.000000e+00> : vector<16x128xf32>
    %4 = tpu.matmul %2, %3, %cst_5 {dimension_numbers = #tpu.dot_dimension_numbers<[1], [0], [0], [1], [0, 0, 1, 1], [], []>} : vector<16x8xf32>, vector<8x128xf32>, vector<16x128xf32> -> vector<16x128xf32>
    %c0_6 = arith.constant 0 : index
    %c0_7 = arith.constant 0 : index
    %5 = vector.load %arg3[%c0_6, %c0_7] : memref<1x128xf32, #tpu.memory_space<vmem>>, vector<1x128xf32>
    %6 = vector.broadcast %5 : vector<1x128xf32> to vector<16x128xf32>
    %7 = arith.addf %4, %6 : vector<16x128xf32>
    %cst_8 = arith.constant 0.000000e+00 : f32
    %8 = vector.broadcast %cst_8 : f32 to vector<16x128xf32>
    %9 = arith.maximumf %7, %8 : vector<16x128xf32>
    %c0_9 = arith.constant 0 : index
    %c0_10 = arith.constant 0 : index
    %10 = vector.load %arg4[%c0_9, %c0_10] : memref<128x128xf32, #tpu.memory_space<vmem>>, vector<128x128xf32>
    %cst_11 = arith.constant dense<0.000000e+00> : vector<16x128xf32>
    %11 = tpu.matmul %9, %10, %cst_11 {dimension_numbers = #tpu.dot_dimension_numbers<[1], [0], [0], [1], [0, 0, 1, 1], [], []>} : vector<16x128xf32>, vector<128x128xf32>, vector<16x128xf32> -> vector<16x128xf32>
    %c0_12 = arith.constant 0 : index
    %c0_13 = arith.constant 0 : index
    %12 = vector.load %arg1[%c0_12, %c0_13] : memref<16x16xf32, #tpu.memory_space<vmem>>, vector<16x16xf32>
    %cst_14 = arith.constant dense<0.000000e+00> : vector<16x128xf32>
    %13 = tpu.matmul %12, %11, %cst_14 {dimension_numbers = #tpu.dot_dimension_numbers<[1], [0], [0], [1], [0, 0, 1, 1], [], []>} : vector<16x16xf32>, vector<16x128xf32>, vector<16x128xf32> -> vector<16x128xf32>
    %c0_15 = arith.constant 0 : index
    %c0_16 = arith.constant 0 : index
    %14 = vector.load %arg5[%c0_15, %c0_16] : memref<1x128xf32, #tpu.memory_space<vmem>>, vector<1x128xf32>
    %15 = vector.broadcast %14 : vector<1x128xf32> to vector<16x128xf32>
    %16 = arith.addf %13, %15 : vector<16x128xf32>
    %cst_17 = arith.constant 0.000000e+00 : f32
    %17 = vector.broadcast %cst_17 : f32 to vector<16x128xf32>
    %18 = arith.maximumf %16, %17 : vector<16x128xf32>
    %c0_18 = arith.constant 0 : index
    %c0_19 = arith.constant 0 : index
    %19 = vector.load %arg8[%c0_18, %c0_19] : memref<16x128xf32, #tpu.memory_space<vmem>>, vector<16x128xf32>
    tpu.vector_store %arg8[%c0_18, %c0_19], %18 {strides = array<i32>} : memref<16x128xf32, #tpu.memory_space<vmem>>, vector<16x128xf32>,
    %c0_20 = arith.constant 0 : index
    %c0_21 = arith.constant 0 : index
    %20 = vector.load %arg6[%c0_20, %c0_21] : memref<1x128xf32, #tpu.memory_space<vmem>>, vector<1x128xf32>
    %21 = vector.broadcast %20 : vector<1x128xf32> to vector<16x128xf32>
    %22 = arith.mulf %18, %21 : vector<16x128xf32>
    %cst_22 = arith.constant dense<0.000000e+00> : vector<16xf32>
    %23 = vector.multi_reduction <add>, %22, %cst_22 [1] : vector<16x128xf32> to vector<16xf32>
    %24 = vector.shape_cast %23 : vector<16xf32> to vector<16x1xf32>
    %c0_23 = arith.constant 0 : index
    %c0_24 = arith.constant 0 : index
    %25 = memref.load %arg7[%c0_23, %c0_24] : memref<1x1xf32, #tpu.memory_space<smem>>
    %26 = vector.broadcast %25 : f32 to vector<16x1xf32>
    %27 = arith.addf %24, %26 : vector<16x1xf32>
    %cst_25 = arith.constant 0.000000e+00 : f32
    %28 = vector.broadcast %cst_25 : f32 to vector<16x1xf32>
    %29 = arith.subf %28, %27 : vector<16x1xf32>
    %30 = math.exp %29 : vector<16x1xf32>
    %cst_26 = arith.constant 1.000000e+00 : f32
    %31 = vector.broadcast %cst_26 : f32 to vector<16x1xf32>
    %32 = arith.addf %31, %30 : vector<16x1xf32>
    %cst_27 = arith.constant 1.000000e+00 : f32
    %33 = vector.broadcast %cst_27 : f32 to vector<16x1xf32>
    %34 = arith.divf %33, %32 : vector<16x1xf32>
    %c0_28 = arith.constant 0 : index
    %c0_29 = arith.constant 0 : index
    %35 = vector.load %arg9[%c0_28, %c0_29] : memref<16x1xf32, #tpu.memory_space<vmem>>, vector<16x1xf32>
    tpu.vector_store %arg9[%c0_28, %c0_29], %34 {strides = array<i32>} : memref<16x1xf32, #tpu.memory_space<vmem>>, vector<16x1xf32>,
    return
  }
}

module attributes {stable_mosaic.version = 11 : i64} {
  func.func @gc34_head_kernel(%arg0: memref<8x128xf32, #tpu.memory_space<vmem>>, %arg1: memref<8x8xf32, #tpu.memory_space<vmem>>, %arg2: memref<128x128xf32, #tpu.memory_space<vmem>>, %arg3: memref<1x128xf32, #tpu.memory_space<vmem>>, %arg4: memref<128x128xf32, #tpu.memory_space<vmem>>, %arg5: memref<1x128xf32, #tpu.memory_space<vmem>>, %arg6: memref<128x128xf32, #tpu.memory_space<vmem>>, %arg7: memref<1x128xf32, #tpu.memory_space<vmem>>, %arg8: memref<1x128xf32, #tpu.memory_space<vmem>>) attributes {dimension_semantics = [], scalar_prefetch = 0 : i64, scratch_operands = 0 : i64, tpu.core_type = #tpu.core_type<tc>} {
    %c0 = arith.constant 0 : index
    %c0_0 = arith.constant 0 : index
    %0 = vector.load %arg0[%c0, %c0_0] : memref<8x128xf32, #tpu.memory_space<vmem>>, vector<8x128xf32>
    %c0_1 = arith.constant 0 : index
    %c0_2 = arith.constant 0 : index
    %1 = vector.load %arg2[%c0_1, %c0_2] : memref<128x128xf32, #tpu.memory_space<vmem>>, vector<128x128xf32>
    %cst = arith.constant dense<0.000000e+00> : vector<8x128xf32>
    %2 = tpu.matmul %0, %1, %cst {dimension_numbers = #tpu.dot_dimension_numbers<[1], [0], [0], [1], [0, 0, 1, 1], [], []>} : vector<8x128xf32>, vector<128x128xf32>, vector<8x128xf32> -> vector<8x128xf32>
    %c0_3 = arith.constant 0 : index
    %c0_4 = arith.constant 0 : index
    %3 = vector.load %arg1[%c0_3, %c0_4] : memref<8x8xf32, #tpu.memory_space<vmem>>, vector<8x8xf32>
    %cst_5 = arith.constant dense<0.000000e+00> : vector<8x128xf32>
    %4 = tpu.matmul %3, %2, %cst_5 {dimension_numbers = #tpu.dot_dimension_numbers<[1], [0], [0], [1], [0, 0, 1, 1], [], []>} : vector<8x8xf32>, vector<8x128xf32>, vector<8x128xf32> -> vector<8x128xf32>
    %c0_6 = arith.constant 0 : index
    %c0_7 = arith.constant 0 : index
    %5 = vector.load %arg3[%c0_6, %c0_7] : memref<1x128xf32, #tpu.memory_space<vmem>>, vector<1x128xf32>
    %6 = vector.broadcast %5 : vector<1x128xf32> to vector<8x128xf32>
    %7 = arith.addf %4, %6 : vector<8x128xf32>
    %cst_8 = arith.constant 0.000000e+00 : f32
    %8 = vector.broadcast %cst_8 : f32 to vector<8x128xf32>
    %9 = arith.maximumf %7, %8 : vector<8x128xf32>
    %c0_9 = arith.constant 0 : index
    %c0_10 = arith.constant 0 : index
    %10 = vector.load %arg4[%c0_9, %c0_10] : memref<128x128xf32, #tpu.memory_space<vmem>>, vector<128x128xf32>
    %cst_11 = arith.constant dense<0.000000e+00> : vector<8x128xf32>
    %11 = tpu.matmul %9, %10, %cst_11 {dimension_numbers = #tpu.dot_dimension_numbers<[1], [0], [0], [1], [0, 0, 1, 1], [], []>} : vector<8x128xf32>, vector<128x128xf32>, vector<8x128xf32> -> vector<8x128xf32>
    %c0_12 = arith.constant 0 : index
    %c0_13 = arith.constant 0 : index
    %12 = vector.load %arg1[%c0_12, %c0_13] : memref<8x8xf32, #tpu.memory_space<vmem>>, vector<8x8xf32>
    %cst_14 = arith.constant dense<0.000000e+00> : vector<8x128xf32>
    %13 = tpu.matmul %12, %11, %cst_14 {dimension_numbers = #tpu.dot_dimension_numbers<[1], [0], [0], [1], [0, 0, 1, 1], [], []>} : vector<8x8xf32>, vector<8x128xf32>, vector<8x128xf32> -> vector<8x128xf32>
    %c0_15 = arith.constant 0 : index
    %c0_16 = arith.constant 0 : index
    %14 = vector.load %arg5[%c0_15, %c0_16] : memref<1x128xf32, #tpu.memory_space<vmem>>, vector<1x128xf32>
    %15 = vector.broadcast %14 : vector<1x128xf32> to vector<8x128xf32>
    %16 = arith.addf %13, %15 : vector<8x128xf32>
    %cst_17 = arith.constant 0.000000e+00 : f32
    %17 = vector.broadcast %cst_17 : f32 to vector<8x128xf32>
    %18 = arith.maximumf %16, %17 : vector<8x128xf32>
    %cst_18 = arith.constant dense<0.000000e+00> : vector<128xf32>
    %19 = vector.multi_reduction <add>, %18, %cst_18 [0] : vector<8x128xf32> to vector<128xf32>
    %20 = vector.shape_cast %19 : vector<128xf32> to vector<1x128xf32>
    %cst_19 = arith.constant 8.000000e+00 : f32
    %21 = vector.broadcast %cst_19 : f32 to vector<1x128xf32>
    %22 = arith.divf %20, %21 : vector<1x128xf32>
    %c0_20 = arith.constant 0 : index
    %c0_21 = arith.constant 0 : index
    %23 = vector.load %arg6[%c0_20, %c0_21] : memref<128x128xf32, #tpu.memory_space<vmem>>, vector<128x128xf32>
    %cst_22 = arith.constant dense<0.000000e+00> : vector<1x128xf32>
    %24 = tpu.matmul %22, %23, %cst_22 {dimension_numbers = #tpu.dot_dimension_numbers<[1], [0], [0], [1], [0, 0, 1, 1], [], []>} : vector<1x128xf32>, vector<128x128xf32>, vector<1x128xf32> -> vector<1x128xf32>
    %c0_23 = arith.constant 0 : index
    %c0_24 = arith.constant 0 : index
    %25 = vector.load %arg7[%c0_23, %c0_24] : memref<1x128xf32, #tpu.memory_space<vmem>>, vector<1x128xf32>
    %26 = arith.addf %24, %25 : vector<1x128xf32>
    %27 = tpu.iota {dimensions = array<i32: 1>} : vector<1x128xi32>
    %c4_i32 = arith.constant 4 : i32
    %28 = vector.broadcast %c4_i32 : i32 to vector<1x128xi32>
    %29 = arith.cmpi slt, %27, %28 : vector<1x128xi32>
    %cst_25 = arith.constant -1.000000e+30 : f32
    %30 = vector.broadcast %cst_25 : f32 to vector<1x128xf32>
    %31 = arith.select %29, %26, %30 : vector<1x128xi1>, vector<1x128xf32>
    %cst_26 = arith.constant dense<0xFF800000> : vector<1xf32>
    %32 = vector.multi_reduction <maximumf>, %31, %cst_26 [1] : vector<1x128xf32> to vector<1xf32>
    %33 = vector.shape_cast %32 : vector<1xf32> to vector<1x1xf32>
    %34 = vector.broadcast %33 : vector<1x1xf32> to vector<1x128xf32>
    %35 = arith.subf %31, %34 : vector<1x128xf32>
    %36 = math.exp %35 : vector<1x128xf32>
    %cst_27 = arith.constant 0.000000e+00 : f32
    %37 = vector.broadcast %cst_27 : f32 to vector<1x128xf32>
    %38 = arith.select %29, %36, %37 : vector<1x128xi1>, vector<1x128xf32>
    %cst_28 = arith.constant dense<0.000000e+00> : vector<1xf32>
    %39 = vector.multi_reduction <add>, %38, %cst_28 [1] : vector<1x128xf32> to vector<1xf32>
    %40 = vector.shape_cast %39 : vector<1xf32> to vector<1x1xf32>
    %41 = math.log %40 : vector<1x1xf32>
    %42 = vector.broadcast %41 : vector<1x1xf32> to vector<1x128xf32>
    %43 = arith.subf %35, %42 : vector<1x128xf32>
    %c0_29 = arith.constant 0 : index
    %c0_30 = arith.constant 0 : index
    %44 = vector.load %arg8[%c0_29, %c0_30] : memref<1x128xf32, #tpu.memory_space<vmem>>, vector<1x128xf32>
    tpu.vector_store %arg8[%c0_29, %c0_30], %43 {strides = array<i32>} : memref<1x128xf32, #tpu.memory_space<vmem>>, vector<1x128xf32>,
    return
  }
}

</mosaic_0001>

<bundles_post_ra>
// kernel: hierarchical_gcn_forward.2
= control target key start
LH: loop header
LB: loop body
LE: loop exit
PB: predicated region body
PF: predicated region fallthrough
CT: control target
= control target key end

     0   :  { %16 = vsyncpa [#allocation4], 0  ;;  %s567_s30 = smov [#allocation3]   ;;  %s670_s0 = inlined_call_operand.vmem [shape: f32[16,8], index: 0, kind: input, shape index: {}]   ;;  %s671_s1 = inlined_call_operand.vmem [shape: f32[16,16], index: 1, kind: input, shape index: {}]   ;;  %s672_s2 = inlined_call_operand.vmem [shape: f32[8,128], index: 2, kind: input, shape index: {}]   ;;  %s673_s3 = inlined_call_operand.vmem [shape: f32[1,128], index: 3, kind: input, shape index: {}]   ;;  %s674_s4 = inlined_call_operand.hbm [shape: f32[128,128], index: 4, kind: input, shape index: {}]   ;;  %s675_s5 = inlined_call_operand.vmem [shape: f32[1,128], index: 5, kind: input, shape index: {}]   ;;  %s676_s6 = inlined_call_operand.vmem [shape: f32[1,128], index: 6, kind: input, shape index: {}]   ;;  %s677_s7 = inlined_call_operand.<no memory space> [shape: f32[1,1], index: 7, kind: input, shape index: {}]   ;;  %s678_s8 = inlined_call_operand.vmem [shape: f32[16,128], index: 8, kind: output, shape index: {0}]   ;;  %s679_s9 = inlined_call_operand.vmem [shape: f32[16,1], index: 9, kind: output, shape index: {1}]  }
   0x1   :  { %s30_s10 = sshll.u32 %s567_s30, 4  ;;  %s31_s10 = int_to_ptr.vmem [resolvable:$true] %s30_s10 }
   0x2   :  { %s553_s11 = scalar_lea.vmem %s31_s10, 2048  ;;  %p558_p1 = scmp.lt.s32.totalorder %s31_s10, %s31_s10 }
   0x3   :  { %p554_p0 = scmp.ne.s32.totalorder %s31_s10, %s553_s11  ;;  %p559_p2 = scmp.lt.s32.totalorder %s553_s11, %s553_s11 }
   0x5   :  { %p560_p3 = por %p559_p2, %p558_p1 }
   0x7   :  { %p561_p4 = pnand %p560_p3, %p554_p0 }
   0x9   :  { %564 = shalt.err (!%p561_p4)
}
   0xa   :  { %s568_s12 = smov 128   ;;  %s569_s13 = smov 8  }
   0xb   :  { %36 = dma.hbm_to_vmem [thread:$0]  %s674_s4, 2048, %s31_s10, [#allocation4], %s568_s12, %s568_s12, %s569_s13  }
   0xc   :  { %565 = dma.done.wait [#allocation4], 2048  }
   0xd   :  { %566 = vsyncadd [#allocation4], 4294965248  ;;  %vm50_vm0 = vcmask 130048   ;;  %v49_v0 = vld [vmem:[%s670_s0 + $0x8] sm:$0xff]  ;;  %v48_v1 = vld [vmem:[%s670_s0] sm:$0xff]  ;;  %vm140_vm1 = vcmask 64512   ;;  %v415_v42 = vstv %s677_s7 }
   0xe   :  { %v46_v2 = vld [vmem:[%s671_s1] sm:$0xff]  ;;  %480 = vmatprep.subr.mxu0 %v49_v0  ;;  %v636_v3 = vld [vmem:[%s671_s1 + $0x8] sm:$0xff]  ;;  %v239_v5 = vld [vmem:[#allocation3 + $0x78] sm:$0xff]  ;;  %vm430_vm2 = vcmask 7168  }
   0xf   :  { %484 = vmatprep.mubr.msk.f32.mxu0 %vm50_vm0, %v46_v2  ;;  %481 = vmatpush3.msra.mxu0 %v49_v0  ;;  %v132_v4 = vld [vmem:[%s672_s2] sm:$0xff]  ;;  %v238_v6 = vld [vmem:[#allocation3 + $0x70] sm:$0xff]  ;;  %v237_v7 = vld [vmem:[#allocation3 + $0x68] sm:$0xff] }
  0x10   :  { %482 = vmatprep.subr.mxu0 %v48_v1  ;;  %492 = vmatprep.subr.mxu1 %v239_v5  ;;  %v236_v8 = vld [vmem:[#allocation3 + $0x60] sm:$0xff]  ;;  %v235_v9 = vld [vmem:[#allocation3 + $0x58] sm:$0xff]  ;;  %v234_v10 = vld [vmem:[#allocation3 + $0x50] sm:$0xff] }
  0x11   :  { %483 = vmatpush3.msra.mxu0 %v48_v1  ;;  %493 = vmatpush3.msra.mxu1 %v239_v5  ;;  %v233_v11 = vld [vmem:[#allocation3 + $0x48] sm:$0xff]  ;;  %v232_v12 = vld [vmem:[#allocation3 + $0x40] sm:$0xff]  ;;  %v231_v13 = vld [vmem:[#allocation3 + $0x38] sm:$0xff] }
  0x12   :  { %485 = vmatmul.mubr.msk.f32.vlgmr.msra.gmra.mxu0 %vm50_vm0, %v636_v3  ;;  %487 = vmatprep.subr.mxu0 %v132_v4  ;;  %v230_v14 = vld [vmem:[#allocation3 + $0x30] sm:$0xff]  ;;  %v229_v15 = vld [vmem:[#allocation3 + $0x28] sm:$0xff]  ;;  %v228_v16 = vld [vmem:[#allocation3 + $0x20] sm:$0xff] }
  0x13   :  { %488 = vmatpush3.msra.mxu0 %v132_v4  ;;  %494 = vmatprep.subr.mxu1 %v238_v6  ;;  %v227_v19 = vld [vmem:[#allocation3 + $0x18] sm:$0xff]  ;;  %v226_v20 = vld [vmem:[#allocation3 + $0x10] sm:$0xff]  ;;  %v225_v21 = vld [vmem:[#allocation3 + $0x8] sm:$0xff] }
  0x14   :  { %495 = vmatpush3.msra.mxu1 %v238_v6  ;;  %v224_v22 = vld [vmem:[#allocation3] sm:$0xff] }
  0x15   :  { %496 = vmatprep.subr.mxu1 %v237_v7  ;;  %v444_v23 = vld [vmem:[%s673_s3] ss:$0 sm:$0xff] }
  0x16   :  { %497 = vmatpush3.msra.mxu1 %v237_v7  ;;  %v447_v32 = vld [vmem:[%s675_s5] ss:$0 sm:$0xff] }
  0x17   :  { %498 = vmatprep.subr.mxu1 %v236_v8  ;;  %v450_v39 = vld [vmem:[%s676_s6] ss:$0 sm:$0xff] }
  0x18   :  { %499 = vmatpush3.msra.mxu1 %v236_v8 }
  0x19   :  { %500 = vmatprep.subr.mxu1 %v235_v9 }
  0x1a   :  { %501 = vmatpush3.msra.mxu1 %v235_v9 }
  0x1b   :  { %502 = vmatprep.subr.mxu1 %v234_v10 }
  0x1c   :  { %503 = vmatpush3.msra.mxu1 %v234_v10 }
  0x1d   :  { %504 = vmatprep.subr.mxu1 %v233_v11 }
  0x1e   :  { %505 = vmatpush3.msra.mxu1 %v233_v11 }
  0x1f   :  { %506 = vmatprep.subr.mxu1 %v232_v12 }
  0x20   :  { %507 = vmatpush3.msra.mxu1 %v232_v12 }
  0x21   :  { %508 = vmatprep.subr.mxu1 %v231_v13 }
  0x22   :  { %509 = vmatpush3.msra.mxu1 %v231_v13 }
  0x23   :  { %510 = vmatprep.subr.mxu1 %v230_v14 }
  0x24   :  { %511 = vmatpush3.msra.mxu1 %v230_v14 }
  0x25   :  { %512 = vmatprep.subr.mxu1 %v229_v15 }
  0x26   :  { %513 = vmatpush3.msra.mxu1 %v229_v15 }
  0x27   :  { %514 = vmatprep.subr.mxu1 %v228_v16 }
  0x28   :  { %515 = vmatpush3.msra.mxu1 %v228_v16 }
  0x29   :  { %516 = vmatprep.subr.mxu1 %v227_v19 }
  0x2a   :  { %517 = vmatpush3.msra.mxu1 %v227_v19 }
  0x2b   :  { %518 = vmatprep.subr.mxu1 %v226_v20 }
  0x2c   :  { %519 = vmatpush3.msra.mxu1 %v226_v20 }
  0x2d   :  { %520 = vmatprep.subr.mxu1 %v225_v21 }
  0x2e   :  { %521 = vmatpush3.msra.mxu1 %v225_v21 }
  0x2f   :  { %522 = vmatprep.subr.mxu1 %v224_v22 }
  0x30   :  { %523 = vmatpush3.msra.mxu1 %v224_v22 }
  0xd2   :  { %v486_v17 = vpop.f32.mrf.mxu0 }
  0xd4   :  { %v123_v18 = vpop.f32.mrf.mxu0 }
  0xd5   :  { %489 = vmatprep.mubr.msk.f32.mxu0 %vm140_vm1, %v123_v18 }
  0xd6   :  { %490 = vmatmul.mubr.msk.f32.vlgmr.msra.gmra.mxu0 %vm140_vm1, %v486_v17 }
  0xd7   :  { %531 = vmatprep.mubr.msk.f32.mxu0 %vm50_vm0, %v46_v2 }
 0x196   :  { %v491_v24 = vpop.f32.mrf.mxu0 }
 0x197   :  { %v219_v25 = vadd.f32 %v491_v24, %v444_v23 }
 0x198   :  { %v213_v26 = vpop.f32.mrf.mxu0 }
 0x199   :  { %v214_v27 = vadd.f32 %v444_v23, %v213_v26  ;;  %v223_v29 = vmax.f32 %v219_v25, 0.0 }
 0x19b   :  { %v222_v28 = vmax.f32 %v214_v27, 0.0 }
 0x19d   :  { %524 = vmatprep.mubr.f32.mxu1 %v222_v28 }
 0x19e   :  { %525 = vmatmul.mubr.f32.vlgmr.msra.gmra.mxu1 %v223_v29 }
 0x25e   :  { %v526_v30 = vpop.f32.mrf.mxu1 }
 0x25f   :  { %527 = vmatprep.subr.mxu0 %v526_v30 }
 0x260   :  { %v306_v31 = vpop.f32.mrf.mxu1  ;;  %528 = vmatpush3.msra.mxu0 %v526_v30 }
 0x261   :  { %529 = vmatprep.subr.mxu0 %v306_v31 }
 0x262   :  { %530 = vmatpush3.msra.mxu0 %v306_v31 }
 0x263   :  { %532 = vmatmul.mubr.msk.f32.vlgmr.msra.gmra.mxu0 %vm50_vm0, %v636_v3 }
 0x323   :  { %v533_v33 = vpop.f32.mrf.mxu0 }
 0x324   :  { %v394_v34 = vadd.f32 %v533_v33, %v447_v32 }
 0x325   :  { %v388_v35 = vpop.f32.mrf.mxu0 }
 0x326   :  { %v398_v36 = vmax.f32 %v394_v34, 0.0  ;;  %v389_v37 = vadd.f32 %v447_v32, %v388_v35 }
 0x328   :  { %400 = vst [vmem:[%s678_s8 + $0x8] sm:$0xff] %v398_v36  ;;  %v397_v38 = vmax.f32 %v389_v37, 0.0  ;;  %v409_v41 = vmul.f32 %v450_v39, %v398_v36 }
 0x32a   :  { %399 = vst [vmem:[%s678_s8] sm:$0xff] %v397_v38  ;;  %v408_v40 = vmul.f32 %v450_v39, %v397_v38 }
 0x32c   :  { %410 = vadd.xlane.f32.xlu0 %v408_v40 }
 0x330   :  { %412 = vadd.xlane.f32.xlu0 %v409_v41 }
 0x3b5   :  { %v411_v43 = vpop.xlane.xlu0 %410 }
 0x3b6   :  { %v416_v44 = vadd.f32 %v415_v42, %v411_v43 }
 0x3b8   :  { %v418_v45 = vsub.f32 0.0, %v416_v44 }
 0x3b9   :  { %v413_v46 = vpop.xlane.xlu0 %412 }
 0x3ba   :  { %v420_v47 = vmul.f32 1.442695, %v418_v45  ;;  %v417_v48 = vadd.f32 %v415_v42, %v413_v46 }
 0x3bc   :  { %537 = vpow2.f32 %v420_v47  ;;  %v419_v49 = vsub.f32 0.0, %v417_v48 }
 0x3be   :  { %v422_v50 = vmul.f32 1.442695, %v419_v49 }
 0x3c0   :  { %539 = vpow2.f32 %v422_v50 }
 0x3c9   :  { %v538_v51 = vpop.eup %537 }
 0x3ca   :  { %v424_v52 = vadd.f32 1.0, %v538_v51 }
 0x3cc   :  { %541 = vrcp.f32 %v424_v52 }
 0x3cd   :  { %v540_v53 = vpop.eup %539 }
 0x3ce   :  { %v425_v54 = vadd.f32 1.0, %v540_v53 }
 0x3d0   :  { %543 = vrcp.f32 %v425_v54 }
 0x3d9   :  { %v542_v55 = vpop.eup %541 }
 0x3da   :  { %431 = vst.msk [vmem:[%s679_s9] sm:$0xff] %vm430_vm2, %v542_v55 }
 0x3dd   :  { %v544_v56 = vpop.eup %543 }
 0x3de   :  { %432 = vst.msk [vmem:[%s679_s9 + $0x8] sm:$0xff] %vm430_vm2, %v544_v56 }
 0x3df   :  { %441 = vsyncpa [#allocation4], 1 }

// kernel: hierarchical_gcn_forward.3
= control target key start
LH: loop header
LB: loop body
LE: loop exit
PB: predicated region body
PF: predicated region fallthrough
CT: control target
= control target key end

     0   :  { %v695_v1 = vmov 0.0   ;;  %vm696_vm0 = vmmov 0   ;;  %s967_s0 = inlined_call_operand.vmem [shape: f32[8,128], index: 0, kind: input, shape index: {}]   ;;  %s968_s1 = inlined_call_operand.vmem [shape: f32[8,8], index: 1, kind: input, shape index: {}]   ;;  %s969_s2 = inlined_call_operand.vmem [shape: f32[128,128], index: 2, kind: input, shape index: {}]   ;;  %s970_s3 = inlined_call_operand.vmem [shape: f32[1,128], index: 3, kind: input, shape index: {}]   ;;  %s971_s4 = inlined_call_operand.vmem [shape: f32[128,128], index: 4, kind: input, shape index: {}]   ;;  %s972_s5 = inlined_call_operand.vmem [shape: f32[1,128], index: 5, kind: input, shape index: {}]   ;;  %s973_s6 = inlined_call_operand.vmem [shape: f32[128,128], index: 6, kind: input, shape index: {}]   ;;  %s974_s7 = inlined_call_operand.vmem [shape: f32[1,128], index: 7, kind: input, shape index: {}]   ;;  %s975_s8 = inlined_call_operand.hbm [shape: f32[1,128], index: 8, kind: output, shape index: {}]  }
   0x1   :  { %v46_v0 = vld [vmem:[%s969_s2 + $0x78] sm:$0xff]  ;;  %551 = vmatprep.subr.mxu0 %v695_v1  ;;  %v45_v2 = vld [vmem:[%s969_s2 + $0x70] sm:$0xff]  ;;  %583 = vmatprep.mubr.msk.f32.mxu0 %vm696_vm0, %v695_v1  ;;  %v44_v3 = vld [vmem:[%s969_s2 + $0x68] sm:$0xff] }
   0x2   :  { %552 = vmatpush3.msra.mxu0 %v46_v0  ;;  %591 = vmatprep.subr.mxu1 %v695_v1  ;;  %v43_v4 = vld [vmem:[%s969_s2 + $0x60] sm:$0xff] }
   0x3   :  { %553 = vmatprep.subr.mxu0 %v695_v1  ;;  %623 = vmatprep.mubr.msk.f32.mxu1 %vm696_vm0, %v695_v1 }
   0x4   :  { %554 = vmatpush3.msra.mxu0 %v45_v2 }
   0x5   :  { %555 = vmatprep.subr.mxu0 %v695_v1 }
   0x6   :  { %13 = vsyncpa [#allocation3], 0  ;;  %556 = vmatpush3.msra.mxu0 %v44_v3  ;;  %v42_v5 = vld [vmem:[%s969_s2 + $0x58] sm:$0xff]  ;;  %v41_v6 = vld [vmem:[%s969_s2 + $0x50] sm:$0xff]  ;;  %vm125_vm1 = vcmask 64512   ;;  %vm463_vm3 = vcmask 1040384  }
   0x7   :  { %557 = vmatprep.subr.mxu0 %v695_v1  ;;  %v40_v7 = vld [vmem:[%s969_s2 + $0x48] sm:$0xff]  ;;  %v39_v8 = vld [vmem:[%s969_s2 + $0x40] sm:$0xff]  ;;  %v38_v9 = vld [vmem:[%s969_s2 + $0x38] sm:$0xff] }
   0x8   :  { %558 = vmatpush3.msra.mxu0 %v43_v4  ;;  %v37_v10 = vld [vmem:[%s969_s2 + $0x30] sm:$0xff]  ;;  %v36_v11 = vld [vmem:[%s969_s2 + $0x28] sm:$0xff]  ;;  %v35_v12 = vld [vmem:[%s969_s2 + $0x20] sm:$0xff] }
   0x9   :  { %559 = vmatprep.subr.mxu0 %v695_v1  ;;  %v34_v13 = vld [vmem:[%s969_s2 + $0x18] sm:$0xff]  ;;  %v33_v14 = vld [vmem:[%s969_s2 + $0x10] sm:$0xff]  ;;  %v32_v15 = vld [vmem:[%s969_s2 + $0x8] sm:$0xff] }
   0xa   :  { %560 = vmatpush3.msra.mxu0 %v42_v5  ;;  %v31_v16 = vld [vmem:[%s969_s2] sm:$0xff]  ;;  %v215_v18 = vld [vmem:[%s971_s4 + $0x78] sm:$0xff]  ;;  %v214_v19 = vld [vmem:[%s971_s4 + $0x70] sm:$0xff] }
   0xb   :  { %561 = vmatprep.subr.mxu0 %v695_v1  ;;  %v30_v17 = vld [vmem:[%s967_s0] sm:$0xff]  ;;  %592 = vmatpush3.msra.mxu1 %v215_v18  ;;  %v213_v20 = vld [vmem:[%s971_s4 + $0x68] sm:$0xff]  ;;  %v211_v22 = vld [vmem:[%s971_s4 + $0x58] sm:$0xff] }
   0xc   :  { %562 = vmatpush3.msra.mxu0 %v41_v6  ;;  %593 = vmatprep.subr.mxu1 %v695_v1  ;;  %v212_v21 = vld [vmem:[%s971_s4 + $0x60] sm:$0xff]  ;;  %v210_v23 = vld [vmem:[%s971_s4 + $0x50] sm:$0xff]  ;;  %v209_v24 = vld [vmem:[%s971_s4 + $0x48] sm:$0xff] }
   0xd   :  { %563 = vmatprep.subr.mxu0 %v695_v1  ;;  %594 = vmatpush3.msra.mxu1 %v214_v19  ;;  %v208_v25 = vld [vmem:[%s971_s4 + $0x40] sm:$0xff]  ;;  %v207_v26 = vld [vmem:[%s971_s4 + $0x38] sm:$0xff]  ;;  %v206_v27 = vld [vmem:[%s971_s4 + $0x30] sm:$0xff] }
   0xe   :  { %564 = vmatpush3.msra.mxu0 %v40_v7  ;;  %595 = vmatprep.subr.mxu1 %v695_v1  ;;  %v205_v28 = vld [vmem:[%s971_s4 + $0x28] sm:$0xff]  ;;  %v204_v29 = vld [vmem:[%s971_s4 + $0x20] sm:$0xff]  ;;  %v203_v30 = vld [vmem:[%s971_s4 + $0x18] sm:$0xff] }
   0xf   :  { %565 = vmatprep.subr.mxu0 %v695_v1  ;;  %596 = vmatpush3.msra.mxu1 %v213_v20  ;;  %v117_v31 = vld [vmem:[%s968_s1] sm:$0xff]  ;;  %v202_v34 = vld [vmem:[%s971_s4 + $0x10] sm:$0xff]  ;;  %v201_v35 = vld [vmem:[%s971_s4 + $0x8] sm:$0xff] }
  0x10   :  { %566 = vmatpush3.msra.mxu0 %v39_v8  ;;  %597 = vmatprep.subr.mxu1 %v695_v1  ;;  %v200_v36 = vld [vmem:[%s971_s4] sm:$0xff]  ;;  %v387_v42 = vld [vmem:[%s973_s6 + $0x78] sm:$0xff]  ;;  %v386_v43 = vld [vmem:[%s973_s6 + $0x70] sm:$0xff] }
  0x11   :  { %567 = vmatprep.subr.mxu0 %v695_v1  ;;  %598 = vmatpush3.msra.mxu1 %v212_v21  ;;  %v492_v37 = vld [vmem:[%s970_s3] ss:$0 sm:$0xff]  ;;  %v385_v44 = vld [vmem:[%s973_s6 + $0x68] sm:$0xff]  ;;  %v383_v46 = vld [vmem:[%s973_s6 + $0x58] sm:$0xff] }
  0x12   :  { %568 = vmatpush3.msra.mxu0 %v38_v9  ;;  %599 = vmatprep.subr.mxu1 %v695_v1  ;;  %v384_v45 = vld [vmem:[%s973_s6 + $0x60] sm:$0xff]  ;;  %v382_v47 = vld [vmem:[%s973_s6 + $0x50] sm:$0xff]  ;;  %v381_v50 = vld [vmem:[%s973_s6 + $0x48] sm:$0xff]  ;;  %v459_v9 = vlaneseq }
  0x13   :  { %569 = vmatprep.subr.mxu0 %v695_v1  ;;  %600 = vmatpush3.msra.mxu1 %v211_v22  ;;  %v380_v51 = vld [vmem:[%s973_s6 + $0x40] sm:$0xff]  ;;  %v379_v52 = vld [vmem:[%s973_s6 + $0x38] sm:$0xff]  ;;  %v378_v53 = vld [vmem:[%s973_s6 + $0x30] sm:$0xff] }
  0x14   :  { %570 = vmatpush3.msra.mxu0 %v37_v10  ;;  %601 = vmatprep.subr.mxu1 %v695_v1  ;;  %v377_v54 = vld [vmem:[%s973_s6 + $0x28] sm:$0xff]  ;;  %v376_v55 = vld [vmem:[%s973_s6 + $0x20] sm:$0xff]  ;;  %v375_v56 = vld [vmem:[%s973_s6 + $0x18] sm:$0xff]  ;;  %v460_v10 = vand.u32 127, %v459_v9 }
  0x15   :  { %571 = vmatprep.subr.mxu0 %v695_v1  ;;  %602 = vmatpush3.msra.mxu1 %v210_v23  ;;  %v374_v57 = vld [vmem:[%s973_s6 + $0x10] sm:$0xff]  ;;  %v373_v58 = vld [vmem:[%s973_s6 + $0x8] sm:$0xff]  ;;  %v372_v59 = vld [vmem:[%s973_s6] sm:$0xff] }
  0x16   :  { %572 = vmatpush3.msra.mxu0 %v36_v11  ;;  %603 = vmatprep.subr.mxu1 %v695_v1  ;;  %v494_v60 = vld [vmem:[%s972_s5] ss:$0 sm:$0xff]  ;;  %vm461_vm2 = vcmp.lt.s32.totalorder %v460_v10, 4  ;;  %s697_s5 = smov [#allocation2]  }
  0x17   :  { %573 = vmatprep.subr.mxu0 %v695_v1  ;;  %604 = vmatpush3.msra.mxu1 %v209_v24 }
  0x18   :  { %574 = vmatpush3.msra.mxu0 %v35_v12  ;;  %605 = vmatprep.subr.mxu1 %v695_v1 }
  0x19   :  { %575 = vmatprep.subr.mxu0 %v695_v1  ;;  %606 = vmatpush3.msra.mxu1 %v208_v25 }
  0x1a   :  { %576 = vmatpush3.msra.mxu0 %v34_v13  ;;  %607 = vmatprep.subr.mxu1 %v695_v1 }
  0x1b   :  { %577 = vmatprep.subr.mxu0 %v695_v1  ;;  %608 = vmatpush3.msra.mxu1 %v207_v26 }
  0x1c   :  { %578 = vmatpush3.msra.mxu0 %v33_v14  ;;  %609 = vmatprep.subr.mxu1 %v695_v1 }
  0x1d   :  { %579 = vmatprep.subr.mxu0 %v695_v1  ;;  %610 = vmatpush3.msra.mxu1 %v206_v27 }
  0x1e   :  { %580 = vmatpush3.msra.mxu0 %v32_v15  ;;  %611 = vmatprep.subr.mxu1 %v695_v1 }
  0x1f   :  { %581 = vmatprep.subr.mxu0 %v695_v1  ;;  %612 = vmatpush3.msra.mxu1 %v205_v28 }
  0x20   :  { %582 = vmatpush3.msra.mxu0 %v31_v16  ;;  %613 = vmatprep.subr.mxu1 %v695_v1 }
  0x21   :  { %584 = vmatmul.mubr.f32.vlgmr.msra.gmra.mxu0 %v30_v17  ;;  %586 = vmatprep.subr.mxu0 %v695_v1 }
  0x22   :  { %588 = vmatprep.mubr.msk.f32.mxu0 %vm696_vm0, %v695_v1  ;;  %614 = vmatpush3.msra.mxu1 %v204_v29 }
  0x23   :  { %615 = vmatprep.subr.mxu1 %v695_v1 }
  0x24   :  { %616 = vmatpush3.msra.mxu1 %v203_v30 }
  0x25   :  { %617 = vmatprep.subr.mxu1 %v695_v1 }
  0x26   :  { %618 = vmatpush3.msra.mxu1 %v202_v34 }
  0x27   :  { %619 = vmatprep.subr.mxu1 %v695_v1 }
  0x28   :  { %620 = vmatpush3.msra.mxu1 %v201_v35 }
  0x29   :  { %621 = vmatprep.subr.mxu1 %v695_v1 }
  0x2a   :  { %622 = vmatpush3.msra.mxu1 %v200_v36 }
  0x2b   :  { %631 = vmatprep.subr.mxu1 %v695_v1 }
  0xe1   :  { %v113_v32 = vpop.f32.mrf.mxu0 }
  0xe2   :  { %587 = vmatpush3.msra.mxu0 %v113_v32 }
  0xe3   :  { %v585_v33 = vpop.f32.mrf.mxu0  ;;  %589 = vmatmul.mubr.msk.f32.vlgmr.msra.gmra.mxu0 %vm125_vm1, %v117_v31  ;;  %626 = vmatprep.subr.mxu0 %v695_v1 }
  0xe4   :  { %628 = vmatprep.mubr.msk.f32.mxu0 %vm696_vm0, %v695_v1 }
 0x1a3   :  { %v195_v38 = vpop.f32.mrf.mxu0 }
 0x1a4   :  { %v196_v39 = vadd.f32 %v492_v37, %v195_v38 }
 0x1a5   :  { %v590_v40 = vpop.f32.mrf.mxu0 }
 0x1a6   :  { %v199_v41 = vmax.f32 %v196_v39, 0.0 }
 0x1a8   :  { %624 = vmatmul.mubr.f32.vlgmr.msra.gmra.mxu1 %v199_v41 }
 0x1a9   :  { %663 = vmatprep.mubr.msk.f32.mxu1 %vm696_vm0, %v695_v1  ;;  %632 = vmatpush3.msra.mxu1 %v387_v42 }
 0x1aa   :  { %633 = vmatprep.subr.mxu1 %v695_v1 }
 0x1ab   :  { %634 = vmatpush3.msra.mxu1 %v386_v43 }
 0x1ac   :  { %635 = vmatprep.subr.mxu1 %v695_v1 }
 0x1ad   :  { %636 = vmatpush3.msra.mxu1 %v385_v44 }
 0x1ae   :  { %637 = vmatprep.subr.mxu1 %v695_v1 }
 0x1af   :  { %638 = vmatpush3.msra.mxu1 %v384_v45 }
 0x1b0   :  { %639 = vmatprep.subr.mxu1 %v695_v1 }
 0x1b1   :  { %640 = vmatpush3.msra.mxu1 %v383_v46 }
 0x1b2   :  { %641 = vmatprep.subr.mxu1 %v695_v1 }
 0x1b3   :  { %642 = vmatpush3.msra.mxu1 %v382_v47 }
 0x1b4   :  { %643 = vmatprep.subr.mxu1 %v695_v1 }
 0x1b5   :  { %644 = vmatpush3.msra.mxu1 %v381_v50 }
 0x1b6   :  { %645 = vmatprep.subr.mxu1 %v695_v1 }
 0x1b7   :  { %646 = vmatpush3.msra.mxu1 %v380_v51 }
 0x1b8   :  { %647 = vmatprep.subr.mxu1 %v695_v1 }
 0x1b9   :  { %648 = vmatpush3.msra.mxu1 %v379_v52 }
 0x1ba   :  { %649 = vmatprep.subr.mxu1 %v695_v1 }
 0x1bb   :  { %650 = vmatpush3.msra.mxu1 %v378_v53 }
 0x1bc   :  { %651 = vmatprep.subr.mxu1 %v695_v1 }
 0x1bd   :  { %652 = vmatpush3.msra.mxu1 %v377_v54 }
 0x1be   :  { %653 = vmatprep.subr.mxu1 %v695_v1 }
 0x1bf   :  { %654 = vmatpush3.msra.mxu1 %v376_v55 }
 0x1c0   :  { %655 = vmatprep.subr.mxu1 %v695_v1 }
 0x1c1   :  { %656 = vmatpush3.msra.mxu1 %v375_v56 }
 0x1c2   :  { %657 = vmatprep.subr.mxu1 %v695_v1 }
 0x1c3   :  { %658 = vmatpush3.msra.mxu1 %v374_v57 }
 0x1c4   :  { %659 = vmatprep.subr.mxu1 %v695_v1 }
 0x1c5   :  { %660 = vmatpush3.msra.mxu1 %v373_v58 }
 0x1c6   :  { %661 = vmatprep.subr.mxu1 %v695_v1  ;;  %v388_v1 = vld [vmem:[%s974_s7] sm:$0x1]  ;;  %s484_s7 = sshll.u32 %s697_s5, 4  ;;  %s485_s7 = int_to_ptr.vmem [resolvable:$true] %s484_s7 }
 0x1c7   :  { %662 = vmatpush3.msra.mxu1 %v372_v59  ;;  %s673_s10 = scalar_lea.vmem %s485_s7, 16  ;;  %s677_s11 = scalar_lea.vmem %s485_s7, 32 }
 0x1c8   :  { %p674_p0 = scmp.ne.s32.totalorder %s485_s7, %s673_s10  ;;  %p678_p1 = scmp.lt.s32.totalorder %s485_s7, %s485_s7 }
 0x1c9   :  { %p679_p2 = scmp.lt.s32.totalorder %s677_s11, %s673_s10 }
 0x1cb   :  { %p680_p3 = por %p679_p2, %p678_p1 }
 0x1cd   :  { %p681_p4 = pnand %p680_p3, %p674_p0 }
 0x268   :  { %v282_v48 = vpop.f32.mrf.mxu1 }
 0x269   :  { %627 = vmatpush3.msra.mxu0 %v282_v48 }
 0x26a   :  { %v625_v49 = vpop.f32.mrf.mxu1  ;;  %629 = vmatmul.mubr.msk.f32.vlgmr.msra.gmra.mxu0 %vm125_vm1, %v117_v31 }
 0x32a   :  { %v359_v61 = vpop.f32.mrf.mxu0 }
 0x32b   :  { %v360_v62 = vadd.f32 %v494_v60, %v359_v61 }
 0x32c   :  { %v630_v63 = vpop.f32.mrf.mxu0 }
 0x32d   :  { %v363_v0 = vmax.f32 %v360_v62, 0.0 }
 0x32f   :  { %v364_v2 = vrot.slane %v363_v0, 4 }
 0x331   :  { %v365_v3 = vadd.f32 %v364_v2, %v363_v0 }
 0x333   :  { %v366_v4 = vrot.slane %v365_v3, 2 }
 0x335   :  { %v367_v5 = vadd.f32 %v366_v4, %v365_v3 }
 0x337   :  { %v368_v6 = vrot.slane %v367_v5, 1 }
 0x339   :  { %v369_v7 = vadd.f32 %v368_v6, %v367_v5 }
 0x33b   :  { %v371_v8 = vmul.f32 0.125, %v369_v7 }
 0x33d   :  { %664 = vmatmul.mubr.f32.vlgmr.msra.gmra.mxu1 %v371_v8 }
 0x3fd   :  { %v455_v11 = vpop.f32.mrf.mxu1 }
 0x3fe   :  { %v456_v12 = vadd.f32 %v455_v11, %v388_v1 }
 0x3ff   :  { %v665_v13 = vpop.f32.mrf.mxu1 }
 0x400   :  { %v462_v14 = vsel %vm461_vm2, %v456_v12, -1e+30 }
 0x401   :  { %v464_v15 = vsel %vm463_vm3, %v462_v14, -inf }
 0x402   :  { %465 = vmax.xlane.f32.xlu0 %v464_v15 }
 0x48b   :  { %v466_v16 = vpop.xlane.xlu0 %465 }
 0x48c   :  { %v467_v17 = vsub.f32 %v462_v14, %v466_v16 }
 0x48e   :  { %v468_v18 = vmul.f32 1.442695, %v467_v17 }
 0x490   :  { %669 = vpow2.f32 %v468_v18 }
 0x49d   :  { %v670_v19 = vpop.eup %669 }
 0x49e   :  { %v470_v20 = vsel %vm461_vm2, %v670_v19, 0.0 }
 0x49f   :  { %v471_v21 = vsel %vm463_vm3, %v470_v20, 0.0 }
 0x4a0   :  { %472 = vadd.xlane.f32.xlu0 %v471_v21 }
 0x529   :  { %v473_v22 = vpop.xlane.xlu0 %472 }
 0x52a   :  { %671 = vlog2.f32 %v473_v22 }
 0x537   :  { %v672_v23 = vpop.eup %671 }
 0x538   :  { %v475_v24 = vmul.f32 0.6931472, %v672_v23 }
 0x53a   :  { %v476_v25 = vsub.f32 %v467_v17, %v475_v24 }
 0x53c   :  { %477 = vst [vmem:[#allocation2] sm:$0x1] %v476_v25 }
 0x53d   :  { %684 = shalt.err (!%p681_p4)
}
 0x53e   :  { %487 = dma.vmem_to_hbm [thread:$0]  %s485_s7, 16, %s975_s8, [#allocation3]  }
 0x53f   :  { %693 = dma.done.wait [#allocation3], 16  }
 0x540   :  { %694 = vsyncadd [#allocation3], 4294967280 }
 0x541   :  { %491 = vsyncpa [#allocation3], 1 }

</bundles_post_ra>
